<compile_context>
chip_gen: v5e
topology: v5e:2x2
jax: 0.10.0
libtpu: 0.0.40
codegen_flags: <defaults>
</compile_context>

<pallas_src>
import jax
import jax.numpy as jnp
from jax import lax
from jax.experimental import pallas as pl
from jax.experimental.pallas import tpu as pltpu

HIDDEN_DIMS = 8

# Problem sizes (small, consistent with an image backbone)
B = 2                     # batch
CIN = 3                   # RGB input channels
H = W = 16                # spatial
COUT = 32                 # backbone feature width ("num_ftrs")
KH = KW = 3               # conv kernel
KDIM = KH * KW * CIN      # 27 im2col contraction length
KPAD = 32                 # padded to a sublane multiple for the MXU
BIAS_ROW = KDIM           # 27 -> all-ones row of the patch matrix (carries the conv bias)
COUT_EXT = 40             # COUT + 1 constant-1 channel, padded to a multiple of 8
ONES_CH = COUT            # 32 -> channel of acc that is identically 1 (carries the fc bias)
N = B * H * W             # 512 — lane-dense batch*spatial axis


def _backbone_kernel(p_ref, wc_ref, wf_ref, o_ref):
    """Fully fused backbone, one invocation, everything resident in VMEM.

    p_ref  : (KPAD, N)               im2col patches; row BIAS_ROW is all ones (folded
                                     conv bias), rows 28..31 are zero padding.
    wc_ref : (COUT_EXT, KPAD)        conv weight; column BIAS_ROW carries the conv bias;
                                     row ONES_CH is one-hot(BIAS_ROW) -> acc[ONES_CH] == 1.
    wf_ref : (HIDDEN_DIMS, COUT_EXT) fc weight; column ONES_CH carries the fc bias.
    o_ref  : (HIDDEN_DIMS, B)        transposed logits.
    """
    # Conv (+ folded bias) as ONE lane-dense im2col matmul, then ReLU.
    acc = jnp.maximum(
        jnp.dot(wc_ref[...], p_ref[...], preferred_element_type=jnp.float32), 0.0
    )                                                                  # (COUT_EXT, N)

    # fc BEFORE pool (fc and mean-pool are both linear and commute past the ReLU'd acc):
    # a well-shaped MXU op with 512 output lanes; fc bias rides the constant-1 channel.
    fc = jnp.dot(wf_ref[...], acc, preferred_element_type=jnp.float32)  # (HIDDEN_DIMS, N)

    # Global average pool per batch element as an XLU lane reduction over 128-aligned
    # static slices (no degenerate (N, B) pool matmul, no pool operand).
    inv_hw = 1.0 / float(H * W)
    for b in range(B):  # B is tiny and static; unrolled at trace time
        seg = fc[:, b * (H * W):(b + 1) * (H * W)]                      # (HIDDEN_DIMS, H*W)
        o_ref[:, b:b + 1] = (jnp.sum(seg, axis=-1, keepdims=True) * inv_hw).astype(o_ref.dtype)


def prepare_params(w_conv, b_conv, w_fc, b_fc):
    """One-time weight packing (hoisted out of the per-call path).

    w_conv: (COUT, CIN, KH, KW) PyTorch conv weight; b_conv: (COUT,)
    w_fc  : (HIDDEN_DIMS, COUT) PyTorch Linear weight; b_fc: (HIDDEN_DIMS,)
    Returns:
      wc_packed: (COUT_EXT, KPAD)       conv weight + conv bias + constant-1 channel row
      wf_packed: (HIDDEN_DIMS, COUT_EXT) fc weight + fc bias column
    """
    wc = jnp.zeros((COUT_EXT, KPAD), jnp.float32)
    wc = wc.at[:COUT, :KDIM].set(w_conv.reshape(COUT, KDIM))
    wc = wc.at[:COUT, BIAS_ROW].set(b_conv)
    wc = wc.at[ONES_CH, BIAS_ROW].set(1.0)

    wf = jnp.zeros((HIDDEN_DIMS, COUT_EXT), jnp.float32)
    wf = wf.at[:, :COUT].set(w_fc)
    wf = wf.at[:, ONES_CH].set(b_fc)
    return wc, wf


@jax.jit
def correct_model_forward(x_nchw, wc_packed, wf_packed):
    """x_nchw: (B, CIN, H, W) float32 (PyTorch layout); packed params from prepare_params().
    Returns pred of shape (B, 4, 2), matching `pred.reshape(-1, 4, 2)`.
    """
    # Patch (im2col) assembly — jitted together with the pallas_call so the
    # pad/stack/transpose/reshape chain is one XLA fusion adjacent to the kernel.
    x_pad = jnp.pad(x_nchw, ((0, 0), (0, 0), (1, 1), (1, 1)))            # (B,CIN,H+2,W+2)
    taps = [x_pad[:, :, kh:kh + H, kw:kw + W]                            # each (B,CIN,H,W)
            for kh in range(KH) for kw in range(KW)]
    p = jnp.stack(taps, axis=2)                                          # (B,CIN,9,H,W)
    p = jnp.transpose(p, (1, 2, 0, 3, 4)).reshape(KDIM, N)               # (27, 512)
    p = jnp.concatenate(
        [p,
         jnp.ones((1, N), jnp.float32),                                  # folded-bias row
         jnp.zeros((KPAD - KDIM - 1, N), jnp.float32)], axis=0)          # (32, 512)

    flops = 2 * COUT_EXT * KPAD * N + 2 * HIDDEN_DIMS * COUT_EXT * N
    bytes_accessed = 4 * (p.size + wc_packed.size + wf_packed.size + HIDDEN_DIMS * B)

    out_t = pl.pallas_call(
        _backbone_kernel,
        out_shape=jax.ShapeDtypeStruct((HIDDEN_DIMS, B), jnp.float32),
        in_specs=[pl.BlockSpec(memory_space=pltpu.MemorySpace.VMEM)] * 3,
        out_specs=pl.BlockSpec(memory_space=pltpu.MemorySpace.VMEM),
        cost_estimate=pl.CostEstimate(flops=flops, transcendentals=0,
                                      bytes_accessed=bytes_accessed),
    )(p, wc_packed, wf_packed)

    # Module's own forward: pred = backbone(x); pred = pred.reshape(-1, 4, 2)
    return out_t.T.reshape(-1, 4, 2)


def _reference_forward(x_nchw, w_conv, b_conv, w_fc, b_fc):
    """Pure-JAX reference (NCHW conv like PyTorch) for correctness check."""
    y = lax.conv_general_dilated(
        x_nchw, w_conv, window_strides=(1, 1), padding=((1, 1), (1, 1)),
        dimension_numbers=("NCHW", "OIHW", "NCHW"))
    y = y + b_conv.reshape(1, COUT, 1, 1)
    y = jnp.maximum(y, 0.0)
    pooled = jnp.mean(y, axis=(2, 3))                # (B, COUT)
    logits = pooled @ w_fc.T + b_fc                  # (B, HIDDEN_DIMS)
    return logits.reshape(-1, 4, 2)


if __name__ == "__main__":
    key = jax.random.PRNGKey(0)
    kx, kwc, kbc, kwf, kbf = jax.random.split(key, 5)

    x = jax.random.normal(kx, (B, CIN, H, W), dtype=jnp.float32)
    w_conv = 0.1 * jax.random.normal(kwc, (COUT, CIN, KH, KW), dtype=jnp.float32)
    b_conv = 0.1 * jax.random.normal(kbc, (COUT,), dtype=jnp.float32)
    w_fc = 0.1 * jax.random.normal(kwf, (HIDDEN_DIMS, COUT), dtype=jnp.float32)
    b_fc = 0.1 * jax.random.normal(kbf, (HIDDEN_DIMS,), dtype=jnp.float32)

    # Weight packing done once at "model load", not per call.
    wc_packed, wf_packed = prepare_params(w_conv, b_conv, w_fc, b_fc)

    pred = correct_model_forward(x, wc_packed, wf_packed)
    pred = jax.block_until_ready(pred)
    assert pred.shape == (B, 4, 2), pred.shape

    ref = _reference_forward(x, w_conv, b_conv, w_fc, b_fc)
    assert jnp.allclose(pred, ref, atol=1e-4, rtol=1e-4), "mismatch vs reference"

    # TODO(synk): training path (target/mask given) needs `quadrilateral_grad_loss`,
    # which is not defined in the provided source; only the inference path is implemented.
    print("KERNEL_OK")
</pallas_src>

<mosaic_0001>
module attributes {stable_mosaic.version = 11 : i64} {
  func.func @_backbone_kernel(%arg0: memref<32x512xf32, #tpu.memory_space<vmem>>, %arg1: memref<40x32xf32, #tpu.memory_space<vmem>>, %arg2: memref<8x40xf32, #tpu.memory_space<vmem>>, %arg3: memref<8x2xf32, #tpu.memory_space<vmem>>) attributes {dimension_semantics = [], scalar_prefetch = 0 : i64, scratch_operands = 0 : i64, tpu.core_type = #tpu.core_type<tc>} {
    %c0 = arith.constant 0 : index
    %c0_0 = arith.constant 0 : index
    %0 = vector.load %arg1[%c0, %c0_0] : memref<40x32xf32, #tpu.memory_space<vmem>>, vector<40x32xf32>
    %c0_1 = arith.constant 0 : index
    %c0_2 = arith.constant 0 : index
    %1 = vector.load %arg0[%c0_1, %c0_2] : memref<32x512xf32, #tpu.memory_space<vmem>>, vector<32x512xf32>
    %cst = arith.constant dense<0.000000e+00> : vector<40x512xf32>
    %2 = tpu.matmul %0, %1, %cst {dimension_numbers = #tpu.dot_dimension_numbers<[1], [0], [0], [1], [0, 0, 1, 1], [], []>} : vector<40x32xf32>, vector<32x512xf32>, vector<40x512xf32> -> vector<40x512xf32>
    %cst_3 = arith.constant 0.000000e+00 : f32
    %3 = vector.broadcast %cst_3 : f32 to vector<40x512xf32>
    %4 = arith.maximumf %2, %3 : vector<40x512xf32>
    %c0_4 = arith.constant 0 : index
    %c0_5 = arith.constant 0 : index
    %5 = vector.load %arg2[%c0_4, %c0_5] : memref<8x40xf32, #tpu.memory_space<vmem>>, vector<8x40xf32>
    %cst_6 = arith.constant dense<0.000000e+00> : vector<8x512xf32>
    %6 = tpu.matmul %5, %4, %cst_6 {dimension_numbers = #tpu.dot_dimension_numbers<[1], [0], [0], [1], [0, 0, 1, 1], [], []>} : vector<8x40xf32>, vector<40x512xf32>, vector<8x512xf32> -> vector<8x512xf32>
    %7 = vector.extract_strided_slice %6 {offsets = [0, 0], sizes = [8, 256], strides = [1, 1]} : vector<8x512xf32> to vector<8x256xf32>
    %cst_7 = arith.constant dense<0.000000e+00> : vector<8xf32>
    %8 = vector.multi_reduction <add>, %7, %cst_7 [1] : vector<8x256xf32> to vector<8xf32>
    %9 = vector.shape_cast %8 : vector<8xf32> to vector<8x1xf32>
    %cst_8 = arith.constant 3.906250e-03 : f32
    %10 = vector.broadcast %cst_8 : f32 to vector<8x1xf32>
    %11 = arith.mulf %9, %10 : vector<8x1xf32>
    %c0_9 = arith.constant 0 : index
    %c0_10 = arith.constant 0 : index
    %12 = vector.load %arg3[%c0_9, %c0_10] : memref<8x2xf32, #tpu.memory_space<vmem>>, vector<8x1xf32>
    tpu.vector_store %arg3[%c0_9, %c0_10], %11 {strides = array<i32>} : memref<8x2xf32, #tpu.memory_space<vmem>>, vector<8x1xf32>,
    %13 = vector.extract_strided_slice %6 {offsets = [0, 256], sizes = [8, 256], strides = [1, 1]} : vector<8x512xf32> to vector<8x256xf32>
    %cst_11 = arith.constant dense<0.000000e+00> : vector<8xf32>
    %14 = vector.multi_reduction <add>, %13, %cst_11 [1] : vector<8x256xf32> to vector<8xf32>
    %15 = vector.shape_cast %14 : vector<8xf32> to vector<8x1xf32>
    %cst_12 = arith.constant 3.906250e-03 : f32
    %16 = vector.broadcast %cst_12 : f32 to vector<8x1xf32>
    %17 = arith.mulf %15, %16 : vector<8x1xf32>
    %c0_13 = arith.constant 0 : index
    %c1 = arith.constant 1 : index
    %18 = vector.load %arg3[%c0_13, %c1] : memref<8x2xf32, #tpu.memory_space<vmem>>, vector<8x1xf32>
    tpu.vector_store %arg3[%c0_13, %c1], %17 {strides = array<i32>} : memref<8x2xf32, #tpu.memory_space<vmem>>, vector<8x1xf32>,
    return
  }
}

</mosaic_0001>

<bundles_post_ra>
// kernel: correct_model_forward.1
= control target key start
LH: loop header
LB: loop body
LE: loop exit
PB: predicated region body
PF: predicated region fallthrough
CT: control target
= control target key end

     0   :  { %vm35_vm0 = vcmask 261120   ;;  %vm200_vm1 = vcmask 326656   ;;  %vm288_vm2 = vcmask 7168   ;;  %vm294_vm3 = vcmask 15368   ;;  %s440_s0 = inlined_call_operand.vmem [shape: f32[32,512], index: 0, kind: input, shape index: {}]   ;;  %s441_s1 = inlined_call_operand.vmem [shape: f32[40,32], index: 1, kind: input, shape index: {}]   ;;  %s442_s2 = inlined_call_operand.vmem [shape: f32[8,40], index: 2, kind: input, shape index: {}]   ;;  %s443_s3 = inlined_call_operand.vmem [shape: f32[8,2], index: 3, kind: output, shape index: {}]  }
   0x1   :  { %v31_v0 = vld [vmem:[%s440_s0 + $0x60] sm:$0xff]  ;;  %v32_v1 = vld [vmem:[%s440_s0 + $0x68] sm:$0xff]  ;;  %v33_v2 = vld [vmem:[%s440_s0 + $0x70] sm:$0xff] }
   0x2   :  { %63 = vmatpush.msra.mxu0 %v31_v0  ;;  %95 = vmatpush.msra.mxu1 %v32_v1  ;;  %v34_v3 = vld [vmem:[%s440_s0 + $0x78] sm:$0xff]  ;;  %v27_v4 = vld [vmem:[%s440_s0 + $0x40] sm:$0xff]  ;;  %v28_v5 = vld [vmem:[%s440_s0 + $0x48] sm:$0xff] }
   0x3   :  { %127 = vmatpush.msra.mxu2 %v33_v2  ;;  %159 = vmatpush.msra.mxu3 %v34_v3  ;;  %v29_v6 = vld [vmem:[%s440_s0 + $0x50] sm:$0xff]  ;;  %v30_v7 = vld [vmem:[%s440_s0 + $0x58] sm:$0xff]  ;;  %v23_v8 = vld [vmem:[%s440_s0 + $0x20] sm:$0xff] }
   0x4   :  { %64 = vmatpush.msra.mxu0 %v27_v4  ;;  %96 = vmatpush.msra.mxu1 %v28_v5  ;;  %v24_v9 = vld [vmem:[%s440_s0 + $0x28] sm:$0xff]  ;;  %v25_v10 = vld [vmem:[%s440_s0 + $0x30] sm:$0xff]  ;;  %v26_v11 = vld [vmem:[%s440_s0 + $0x38] sm:$0xff] }
   0x5   :  { %128 = vmatpush.msra.mxu2 %v29_v6  ;;  %160 = vmatpush.msra.mxu3 %v30_v7  ;;  %v19_v12 = vld [vmem:[%s440_s0] sm:$0xff]  ;;  %v20_v13 = vld [vmem:[%s440_s0 + $0x8] sm:$0xff]  ;;  %v21_v14 = vld [vmem:[%s440_s0 + $0x10] sm:$0xff] }
   0x6   :  { %65 = vmatpush.msra.mxu0 %v23_v8  ;;  %97 = vmatpush.msra.mxu1 %v24_v9  ;;  %v22_v15 = vld [vmem:[%s440_s0 + $0x18] sm:$0xff]  ;;  %v14_v16 = vld [vmem:[%s441_s1] sm:$0xff]  ;;  %v15_v17 = vld [vmem:[%s441_s1 + $0x8] sm:$0xff] }
   0x7   :  { %129 = vmatpush.msra.mxu2 %v25_v10  ;;  %161 = vmatpush.msra.mxu3 %v26_v11  ;;  %v16_v18 = vld [vmem:[%s441_s1 + $0x10] sm:$0xff]  ;;  %v17_v19 = vld [vmem:[%s441_s1 + $0x18] sm:$0xff]  ;;  %v18_v20 = vld [vmem:[%s441_s1 + $0x20] sm:$0xff] }
   0x8   :  { %66 = vmatpush.msra.mxu0 %v19_v12  ;;  %98 = vmatpush.msra.mxu1 %v20_v13  ;;  %v199_v55 = vld [vmem:[%s442_s2] sm:$0xff] }
   0x9   :  { %130 = vmatpush.msra.mxu2 %v21_v14  ;;  %162 = vmatpush.msra.mxu3 %v22_v15 }
   0xa   :  { %300 = vmatmul.msk.f32.vlgmr.msra.gmra.mxu0 %vm35_vm0, %v14_v16  ;;  %305 = vmatmul.msk.f32.vlgmr.msra.gmra.mxu1 %vm35_vm0, %v14_v16 }
   0xb   :  { %310 = vmatmul.msk.f32.vlgmr.msra.gmra.mxu2 %vm35_vm0, %v14_v16  ;;  %315 = vmatmul.msk.f32.vlgmr.msra.gmra.mxu3 %vm35_vm0, %v14_v16 }
  0x12   :  { %301 = vmatmul.msk.f32.gmra.mxu0 %vm35_vm0, %v15_v17  ;;  %306 = vmatmul.msk.f32.gmra.mxu1 %vm35_vm0, %v15_v17 }
  0x13   :  { %311 = vmatmul.msk.f32.gmra.mxu2 %vm35_vm0, %v15_v17  ;;  %316 = vmatmul.msk.f32.gmra.mxu3 %vm35_vm0, %v15_v17 }
  0x1a   :  { %302 = vmatmul.msk.f32.gmra.mxu0 %vm35_vm0, %v16_v18  ;;  %307 = vmatmul.msk.f32.gmra.mxu1 %vm35_vm0, %v16_v18 }
  0x1b   :  { %312 = vmatmul.msk.f32.gmra.mxu2 %vm35_vm0, %v16_v18  ;;  %317 = vmatmul.msk.f32.gmra.mxu3 %vm35_vm0, %v16_v18 }
  0x22   :  { %303 = vmatmul.msk.f32.gmra.mxu0 %vm35_vm0, %v17_v19  ;;  %308 = vmatmul.msk.f32.gmra.mxu1 %vm35_vm0, %v17_v19 }
  0x23   :  { %313 = vmatmul.msk.f32.gmra.mxu2 %vm35_vm0, %v17_v19  ;;  %318 = vmatmul.msk.f32.gmra.mxu3 %vm35_vm0, %v17_v19 }
  0x2a   :  { %304 = vmatmul.msk.f32.gmra.mxu0 %vm35_vm0, %v18_v20  ;;  %309 = vmatmul.msk.f32.gmra.mxu1 %vm35_vm0, %v18_v20 }
  0x2b   :  { %314 = vmatmul.msk.f32.gmra.mxu2 %vm35_vm0, %v18_v20  ;;  %319 = vmatmul.msk.f32.gmra.mxu3 %vm35_vm0, %v18_v20 }
  0x87   :  { %v68_v21 = vpop.f32.mrf.mxu0  ;;  %v100_v22 = vpop.f32.mrf.mxu1 }
  0x88   :  { %v179_v51 = vmax.f32 %v68_v21, 0.0  ;;  %v180_v52 = vmax.f32 %v100_v22, 0.0 }
  0x8e   :  { %v132_v23 = vpop.f32.mrf.mxu2  ;;  %v164_v24 = vpop.f32.mrf.mxu3 }
  0x8f   :  { %v71_v25 = vpop.f32.mrf.mxu0  ;;  %v103_v26 = vpop.f32.mrf.mxu1  ;;  %v181_v60 = vmax.f32 %v132_v23, 0.0  ;;  %v182_v61 = vmax.f32 %v164_v24, 0.0 }
  0x90   :  { %v183_v45 = vmax.f32 %v71_v25, 0.0  ;;  %v184_v46 = vmax.f32 %v103_v26, 0.0 }
  0x96   :  { %v135_v27 = vpop.f32.mrf.mxu2  ;;  %v167_v28 = vpop.f32.mrf.mxu3 }
  0x97   :  { %v74_v29 = vpop.f32.mrf.mxu0  ;;  %v106_v30 = vpop.f32.mrf.mxu1  ;;  %v185_v58 = vmax.f32 %v135_v27, 0.0  ;;  %v186_v59 = vmax.f32 %v167_v28, 0.0 }
  0x98   :  { %v187_v43 = vmax.f32 %v74_v29, 0.0  ;;  %v188_v44 = vmax.f32 %v106_v30, 0.0 }
  0x9e   :  { %v138_v31 = vpop.f32.mrf.mxu2  ;;  %v170_v32 = vpop.f32.mrf.mxu3 }
  0x9f   :  { %v77_v33 = vpop.f32.mrf.mxu0  ;;  %v109_v34 = vpop.f32.mrf.mxu1  ;;  %v189_v56 = vmax.f32 %v138_v31, 0.0  ;;  %v190_v57 = vmax.f32 %v170_v32, 0.0 }
  0xa0   :  { %v191_v41 = vmax.f32 %v77_v33, 0.0  ;;  %v192_v42 = vmax.f32 %v109_v34, 0.0 }
  0xa6   :  { %v141_v35 = vpop.f32.mrf.mxu2  ;;  %v173_v36 = vpop.f32.mrf.mxu3 }
  0xa7   :  { %v80_v37 = vpop.f32.mrf.mxu0  ;;  %v112_v38 = vpop.f32.mrf.mxu1  ;;  %v193_v53 = vmax.f32 %v141_v35, 0.0  ;;  %v194_v54 = vmax.f32 %v173_v36, 0.0 }
  0xa8   :  { %v195_v39 = vmax.f32 %v80_v37, 0.0  ;;  %v196_v40 = vmax.f32 %v112_v38, 0.0 }
  0xaa   :  { %215 = vmatpush.msrb.mxu0 %v195_v39  ;;  %235 = vmatpush.msrb.mxu1 %v196_v40 }
  0xac   :  { %216 = vmatpush.msrb.mxu0 %v191_v41  ;;  %236 = vmatpush.msrb.mxu1 %v192_v42 }
  0xae   :  { %v144_v47 = vpop.f32.mrf.mxu2  ;;  %v176_v48 = vpop.f32.mrf.mxu3  ;;  %217 = vmatpush.msrb.mxu0 %v187_v43  ;;  %237 = vmatpush.msrb.mxu1 %v188_v44 }
  0xaf   :  { %v197_v49 = vmax.f32 %v144_v47, 0.0  ;;  %v198_v50 = vmax.f32 %v176_v48, 0.0 }
  0xb0   :  { %218 = vmatpush.msrb.mxu0 %v183_v45  ;;  %238 = vmatpush.msrb.mxu1 %v184_v46 }
  0xb1   :  { %255 = vmatpush.msrb.mxu2 %v197_v49  ;;  %275 = vmatpush.msrb.mxu3 %v198_v50 }
  0xb2   :  { %219 = vmatpush.msrb.mxu0 %v179_v51  ;;  %239 = vmatpush.msrb.mxu1 %v180_v52 }
  0xb3   :  { %256 = vmatpush.msrb.mxu2 %v193_v53  ;;  %276 = vmatpush.msrb.mxu3 %v194_v54 }
  0xb4   :  { %320 = vmatmul.msk.f32.vlgmr.msrb.gmra.mxu0 %vm200_vm1, %v199_v55  ;;  %321 = vmatmul.msk.f32.vlgmr.msrb.gmra.mxu1 %vm200_vm1, %v199_v55 }
  0xb5   :  { %257 = vmatpush.msrb.mxu2 %v189_v56  ;;  %277 = vmatpush.msrb.mxu3 %v190_v57 }
  0xb7   :  { %258 = vmatpush.msrb.mxu2 %v185_v58  ;;  %278 = vmatpush.msrb.mxu3 %v186_v59 }
  0xb9   :  { %259 = vmatpush.msrb.mxu2 %v181_v60  ;;  %279 = vmatpush.msrb.mxu3 %v182_v61 }
  0xba   :  { %322 = vmatmul.msk.f32.vlgmr.msrb.gmra.mxu2 %vm200_vm1, %v199_v55  ;;  %323 = vmatmul.msk.f32.vlgmr.msrb.gmra.mxu3 %vm200_vm1, %v199_v55 }
 0x131   :  { %v221_v62 = vpop.f32.mrf.mxu0  ;;  %v241_v63 = vpop.f32.mrf.mxu1 }
 0x132   :  { %v284_v0 = vadd.f32 %v241_v63, %v221_v62 }
 0x134   :  { %285 = vadd.xlane.f32.xlu0 %v284_v0 }
 0x13d   :  { %v261_v1 = vpop.f32.mrf.mxu2  ;;  %v281_v2 = vpop.f32.mrf.mxu3 }
 0x13e   :  { %v290_v3 = vadd.f32 %v281_v2, %v261_v1 }
 0x140   :  { %291 = vadd.xlane.f32.xlu0 %v290_v3 }
 0x1a7   :  { %v286_v4 = vpop.xlane.xlu0 %285 }
 0x1a8   :  { %v287_v5 = vmul.f32 0.00390625, %v286_v4 }
 0x1aa   :  { %289 = vst.msk [vmem:[%s443_s3] sm:$0xff] %vm288_vm2, %v287_v5 }
 0x1b3   :  { %v292_v6 = vpop.xlane.xlu0 %291 }
 0x1b4   :  { %v293_v7 = vmul.f32 0.00390625, %v292_v6 }
 0x1b6   :  { %295 = vst.msk [vmem:[%s443_s3] sm:$0xff] %vm294_vm3, %v293_v7 }

</bundles_post_ra>
